<compile_context>
chip_gen: v6e
topology: v6e:2x2x1
jax: 0.10.0
libtpu: 0.0.40
codegen_flags: <defaults>
</compile_context>

<pallas_src>
import functools

import jax
import jax.numpy as jnp
from jax.experimental import pallas as pl
from jax.experimental.pallas import tpu as pltpu


# ---------------------------------------------------------------------------
# Hardware queries / block sizing
# ---------------------------------------------------------------------------
def _round_up(v, m):
    return (v + m - 1) // m * m


def _vmem_capacity_bytes():
    try:
        return int(pltpu.get_tpu_info().vmem_capacity_bytes)
    except Exception:
        return 64 * 1024 * 1024          # conservative (v7x-sized) default


def _num_tensorcores():
    try:
        return int(getattr(jax.devices()[0], "num_cores", 1) or 1)
    except Exception:
        return 1


def _pick_cblk(B, C, H, W, stride, itemsize):
    """Largest channel block whose double-buffered, (sublane,128)-padded VMEM
    footprint (input block + output block, for either kernel path) fits a
    per-generation budget derived from the chip's VMEM capacity."""
    hs = ws = stride
    Hp, Wp = H // hs, W // ws
    S = hs * ws
    sub = 8 * max(1, 4 // itemsize)              # 8 f32 / 16 bf16 / 32 int8 sublanes
    budget = _vmem_capacity_bytes() // 4         # stay well inside the scoped window

    def footprint(cblk):
        # strided path: in (cblk*H, W), out (S, cblk*Hp, Wp)
        a = (_round_up(cblk * H, sub) * _round_up(W, 128)
             + S * _round_up(cblk * Hp, sub) * _round_up(Wp, 128)) * itemsize
        # fallback path: in (cblk, H, W), out (S, cblk, Hp, Wp)
        b = (cblk * _round_up(H, sub) * _round_up(W, 128)
             + S * cblk * _round_up(Hp, sub) * _round_up(Wp, 128)) * itemsize
        return 2 * max(a, b)                     # x2: pipeline double buffering

    divisors = [d for d in range(1, C + 1) if C % d == 0]
    fitting = [d for d in divisors if footprint(d) <= budget] or [1]
    cblk = max(fitting)
    # Only multi-TensorCore chips (v7x) need >=2 grid steps to keep both cores busy.
    if _num_tensorcores() >= 2 and B * (C // cblk) < 2 and len(fitting) > 1:
        cblk = sorted(fitting)[-2]
    return cblk, footprint(cblk)


def _compiler_params(vmem_limit_bytes):
    return pltpu.CompilerParams(
        dimension_semantics=("parallel", "parallel"),
        vmem_limit_bytes=int(vmem_limit_bytes),
    )


def _cost(B, C, H, W, itemsize):
    # Pure data movement: read + write every element once.
    return pl.CostEstimate(flops=0, transcendentals=0,
                           bytes_accessed=int(2 * B * C * H * W * itemsize))


# ---------------------------------------------------------------------------
# Primary path: contiguous pipelined block + strided ref reads (one per phase).
# ---------------------------------------------------------------------------
def _reorg_strided(x, *, stride, cblk, vmem_limit):
    B, C, H, W = x.shape
    hs = ws = stride
    Hp, Wp = H // hs, W // ws
    S = hs * ws
    G = C // cblk
    nrows = cblk * Hp
    itemsize = jnp.dtype(x.dtype).itemsize

    def kernel(x_ref, o_ref):
        # x_ref: (cblk*H, W) fully-contiguous channel block (lane dim = W).
        # o_ref: (S, cblk*Hp, Wp); row k of each phase is channel cr = k // Hp, hp = k % Hp.
        for i in range(hs):
            for j in range(ws):
                # Row selection i::hs collapses to a single stride because H % hs == 0:
                # source row (i + k*hs) == cr*H + (hp*hs + i) for k = cr*Hp + hp.
                o_ref[i * ws + j, :, :] = x_ref[
                    pl.ds(i, nrows, stride=hs), pl.ds(j, Wp, stride=ws)
                ]

    xv = x.reshape(B, G, cblk * H, W)                             # free view
    out5 = pl.pallas_call(
        kernel,
        grid=(B, G),
        in_specs=[pl.BlockSpec((None, None, cblk * H, W),
                               lambda b, g: (b, g, 0, 0))],
        out_specs=pl.BlockSpec((None, S, None, cblk * Hp, Wp),
                               lambda b, g: (b, 0, g, 0, 0)),
        out_shape=jax.ShapeDtypeStruct((B, S, G, cblk * Hp, Wp), x.dtype),
        compiler_params=_compiler_params(vmem_limit),
        cost_estimate=_cost(B, C, H, W, itemsize),
    )(xv)
    # (b, s, g, cr*Hp+hp, wp) -> (b, s*C + g*cblk + cr, hp, wp): flat-order identical.
    return out5.reshape(B, S * C, Hp, Wp)


# ---------------------------------------------------------------------------
# Fallback path (only used if strided ref reads do not lower): channel-fused
# slice+concat with exactly one store per (i, j) phase.  Uses only ops that are
# guaranteed to lower.
# ---------------------------------------------------------------------------
def _reorg_concat(x, *, stride, cblk, vmem_limit):
    B, C, H, W = x.shape
    hs = ws = stride
    Hp, Wp = H // hs, W // ws
    S = hs * ws
    G = C // cblk
    itemsize = jnp.dtype(x.dtype).itemsize

    def kernel(x_ref, o_ref):
        # x_ref: (cblk, H, W); o_ref: (S, cblk, Hp, Wp).
        xb = x_ref[...]
        for i in range(hs):
            rows = jnp.concatenate(
                [xb[:, r:r + 1, :] for r in range(i, H, hs)], axis=1)       # (cblk,Hp,W)
            for j in range(ws):
                tile = jnp.concatenate(
                    [rows[:, :, c:c + 1] for c in range(j, W, ws)], axis=2)  # (cblk,Hp,Wp)
                o_ref[i * ws + j, :, :, :] = tile

    xv = x.reshape(B, G, cblk, H, W)                              # free view
    out6 = pl.pallas_call(
        kernel,
        grid=(B, G),
        in_specs=[pl.BlockSpec((None, None, cblk, H, W),
                               lambda b, g: (b, g, 0, 0, 0))],
        out_specs=pl.BlockSpec((None, S, None, cblk, Hp, Wp),
                               lambda b, g: (b, 0, g, 0, 0, 0)),
        out_shape=jax.ShapeDtypeStruct((B, S, G, cblk, Hp, Wp), x.dtype),
        compiler_params=_compiler_params(vmem_limit),
        cost_estimate=_cost(B, C, H, W, itemsize),
    )(xv)
    return out6.reshape(B, S * C, Hp, Wp)


# ---------------------------------------------------------------------------
# Public entry point with a deterministic compile-time capability probe.
# ---------------------------------------------------------------------------
_SELECTED_PATH = {}   # (shape, dtype, stride) -> ("strided" | "concat-fallback", detail)
_FN_CACHE = {}


def _build_reorg_fn(shape, dtype, stride):
    B, C, H, W = shape
    itemsize = jnp.dtype(dtype).itemsize
    cblk, fp = _pick_cblk(B, C, H, W, stride, itemsize)
    cap = _vmem_capacity_bytes()
    vmem_limit = int(min(max(fp + (4 << 20), 32 << 20), int(cap * 0.9)))
    key = (tuple(shape), jnp.dtype(dtype).name, int(stride))

    primary = jax.jit(functools.partial(
        _reorg_strided, stride=stride, cblk=cblk, vmem_limit=vmem_limit))
    spec = jax.ShapeDtypeStruct(shape, dtype)
    try:
        # Deterministic compile-time probe: any API or Mosaic-lowering problem with the
        # strided-read kernel surfaces here, independent of eager-vs-jit call order.
        primary.lower(spec).compile()
        _SELECTED_PATH[key] = ("strided", "")
        return primary
    except Exception as e:   # recorded (not hidden) so a regression is observable
        _SELECTED_PATH[key] = ("concat-fallback", repr(e))
        return jax.jit(functools.partial(
            _reorg_concat, stride=stride, cblk=cblk, vmem_limit=vmem_limit))


def reorg(x, stride=2):
    """Pallas implementation of the PyTorch Reorg module (NCHW in / NCHW out)."""
    assert x.ndim == 4
    B, C, H, W = x.shape
    assert H % stride == 0 and W % stride == 0
    key = (tuple(x.shape), jnp.dtype(x.dtype).name, int(stride))
    fn = _FN_CACHE.get(key)
    if fn is None:
        fn = _build_reorg_fn(x.shape, x.dtype, stride)
        _FN_CACHE[key] = fn
    return fn(x)


def reorg_ref(x, stride=2):
    """Pure-JAX reference: literal transcription of the PyTorch forward."""
    B, C, H, W = x.shape
    hs = ws = stride
    x = x.reshape(B, C, H // hs, hs, W // ws, ws)
    x = jnp.transpose(x, (0, 1, 2, 4, 3, 5))          # .transpose(3, 4)
    x = x.reshape(B, C, (H // hs) * (W // ws), hs * ws)
    x = jnp.transpose(x, (0, 1, 3, 2))                 # .transpose(2, 3)
    x = x.reshape(B, C, hs * ws, H // hs, W // ws)
    x = jnp.transpose(x, (0, 2, 1, 3, 4))              # .transpose(1, 2)
    return x.reshape(B, hs * ws * C, H // hs, W // ws)


if __name__ == "__main__":
    key = jax.random.PRNGKey(0)
    k1, k2 = jax.random.split(key)
    stride = 2

    # Case 1: f32, NCHW (the reviewed configuration).
    B, C, H, W = 2, 4, 16, 16
    x = jax.random.normal(k1, (B, C, H, W), dtype=jnp.float32)
    out = jax.block_until_ready(reorg(x, stride=stride))
    exp = reorg_ref(x, stride=stride)
    assert out.shape == (B, stride * stride * C, H // stride, W // stride), out.shape
    assert out.dtype == x.dtype
    assert jnp.array_equal(out, exp), "Pallas Reorg (f32) mismatch vs reference"

    # Case 2: bf16 + non-square spatial (packing / layout robustness).
    B2, C2, H2, W2 = 1, 6, 8, 16
    x2 = jax.random.normal(k2, (B2, C2, H2, W2), dtype=jnp.bfloat16)
    out2 = jax.block_until_ready(reorg(x2, stride=stride))
    assert jnp.array_equal(out2, reorg_ref(x2, stride=stride)), \
        "Pallas Reorg (bf16) mismatch vs reference"

    print("KERNEL_OK")
</pallas_src>

<mosaic_0001>
module attributes {stable_mosaic.version = 11 : i64} {
  func.func @kernel(%arg0: i32, %arg1: i32, %arg2: memref<1x1x4x16x16xf32, #tpu.memory_space<vmem>>, %arg3: memref<1x4x1x4x8x8xf32, #tpu.memory_space<vmem>>) attributes {dimension_semantics = [#tpu.dimension_semantics<parallel>, #tpu.dimension_semantics<parallel>], iteration_bounds = array<i64: 2, 1>, scalar_prefetch = 0 : i64, scratch_operands = 0 : i64, tpu.core_type = #tpu.core_type<tc>, window_params = [{transform_indices = @transform_0, window_bounds = array<i64: 1, 1, 4, 16, 16>}, {transform_indices = @transform_1, window_bounds = array<i64: 1, 4, 1, 4, 8, 8>}]} {
    %c0 = arith.constant 0 : index
    %c0_0 = arith.constant 0 : index
    %c0_1 = arith.constant 0 : index
    %c0_2 = arith.constant 0 : index
    %c0_3 = arith.constant 0 : index
    %0 = vector.load %arg2[%c0, %c0_0, %c0_1, %c0_2, %c0_3] : memref<1x1x4x16x16xf32, #tpu.memory_space<vmem>>, vector<1x1x4x16x16xf32>
    %1 = vector.shape_cast %0 : vector<1x1x4x16x16xf32> to vector<4x16x16xf32>
    %2 = vector.extract_strided_slice %1 {offsets = [0, 0, 0], sizes = [4, 1, 16], strides = [1, 1, 1]} : vector<4x16x16xf32> to vector<4x1x16xf32>
    %3 = vector.extract_strided_slice %1 {offsets = [0, 2, 0], sizes = [4, 1, 16], strides = [1, 1, 1]} : vector<4x16x16xf32> to vector<4x1x16xf32>
    %4 = vector.extract_strided_slice %1 {offsets = [0, 4, 0], sizes = [4, 1, 16], strides = [1, 1, 1]} : vector<4x16x16xf32> to vector<4x1x16xf32>
    %5 = vector.extract_strided_slice %1 {offsets = [0, 6, 0], sizes = [4, 1, 16], strides = [1, 1, 1]} : vector<4x16x16xf32> to vector<4x1x16xf32>
    %6 = vector.extract_strided_slice %1 {offsets = [0, 8, 0], sizes = [4, 1, 16], strides = [1, 1, 1]} : vector<4x16x16xf32> to vector<4x1x16xf32>
    %7 = vector.extract_strided_slice %1 {offsets = [0, 10, 0], sizes = [4, 1, 16], strides = [1, 1, 1]} : vector<4x16x16xf32> to vector<4x1x16xf32>
    %8 = vector.extract_strided_slice %1 {offsets = [0, 12, 0], sizes = [4, 1, 16], strides = [1, 1, 1]} : vector<4x16x16xf32> to vector<4x1x16xf32>
    %9 = vector.extract_strided_slice %1 {offsets = [0, 14, 0], sizes = [4, 1, 16], strides = [1, 1, 1]} : vector<4x16x16xf32> to vector<4x1x16xf32>
    %10 = tpu.concatenate %2, %3, %4, %5, %6, %7, %8, %9 in 1 : vector<4x1x16xf32>, vector<4x1x16xf32>, vector<4x1x16xf32>, vector<4x1x16xf32>, vector<4x1x16xf32>, vector<4x1x16xf32>, vector<4x1x16xf32>, vector<4x1x16xf32> -> vector<4x8x16xf32>
    %11 = vector.extract_strided_slice %10 {offsets = [0, 0, 0], sizes = [4, 8, 1], strides = [1, 1, 1]} : vector<4x8x16xf32> to vector<4x8x1xf32>
    %12 = vector.extract_strided_slice %10 {offsets = [0, 0, 2], sizes = [4, 8, 1], strides = [1, 1, 1]} : vector<4x8x16xf32> to vector<4x8x1xf32>
    %13 = vector.extract_strided_slice %10 {offsets = [0, 0, 4], sizes = [4, 8, 1], strides = [1, 1, 1]} : vector<4x8x16xf32> to vector<4x8x1xf32>
    %14 = vector.extract_strided_slice %10 {offsets = [0, 0, 6], sizes = [4, 8, 1], strides = [1, 1, 1]} : vector<4x8x16xf32> to vector<4x8x1xf32>
    %15 = vector.extract_strided_slice %10 {offsets = [0, 0, 8], sizes = [4, 8, 1], strides = [1, 1, 1]} : vector<4x8x16xf32> to vector<4x8x1xf32>
    %16 = vector.extract_strided_slice %10 {offsets = [0, 0, 10], sizes = [4, 8, 1], strides = [1, 1, 1]} : vector<4x8x16xf32> to vector<4x8x1xf32>
    %17 = vector.extract_strided_slice %10 {offsets = [0, 0, 12], sizes = [4, 8, 1], strides = [1, 1, 1]} : vector<4x8x16xf32> to vector<4x8x1xf32>
    %18 = vector.extract_strided_slice %10 {offsets = [0, 0, 14], sizes = [4, 8, 1], strides = [1, 1, 1]} : vector<4x8x16xf32> to vector<4x8x1xf32>
    %19 = tpu.concatenate %11, %12, %13, %14, %15, %16, %17, %18 in 2 : vector<4x8x1xf32>, vector<4x8x1xf32>, vector<4x8x1xf32>, vector<4x8x1xf32>, vector<4x8x1xf32>, vector<4x8x1xf32>, vector<4x8x1xf32>, vector<4x8x1xf32> -> vector<4x8x8xf32>
    %c0_4 = arith.constant 0 : index
    %c0_5 = arith.constant 0 : index
    %c0_6 = arith.constant 0 : index
    %c0_7 = arith.constant 0 : index
    %c0_8 = arith.constant 0 : index
    %c0_9 = arith.constant 0 : index
    %20 = vector.load %arg3[%c0_4, %c0_5, %c0_6, %c0_7, %c0_8, %c0_9] : memref<1x4x1x4x8x8xf32, #tpu.memory_space<vmem>>, vector<1x1x1x4x8x8xf32>
    %21 = vector.shape_cast %20 : vector<1x1x1x4x8x8xf32> to vector<4x8x8xf32>
    %22 = vector.shape_cast %19 : vector<4x8x8xf32> to vector<1x1x1x4x8x8xf32>
    tpu.vector_store %arg3[%c0_4, %c0_5, %c0_6, %c0_7, %c0_8, %c0_9], %22 {strides = array<i32>} : memref<1x4x1x4x8x8xf32, #tpu.memory_space<vmem>>, vector<1x1x1x4x8x8xf32>,
    %23 = vector.extract_strided_slice %10 {offsets = [0, 0, 1], sizes = [4, 8, 1], strides = [1, 1, 1]} : vector<4x8x16xf32> to vector<4x8x1xf32>
    %24 = vector.extract_strided_slice %10 {offsets = [0, 0, 3], sizes = [4, 8, 1], strides = [1, 1, 1]} : vector<4x8x16xf32> to vector<4x8x1xf32>
    %25 = vector.extract_strided_slice %10 {offsets = [0, 0, 5], sizes = [4, 8, 1], strides = [1, 1, 1]} : vector<4x8x16xf32> to vector<4x8x1xf32>
    %26 = vector.extract_strided_slice %10 {offsets = [0, 0, 7], sizes = [4, 8, 1], strides = [1, 1, 1]} : vector<4x8x16xf32> to vector<4x8x1xf32>
    %27 = vector.extract_strided_slice %10 {offsets = [0, 0, 9], sizes = [4, 8, 1], strides = [1, 1, 1]} : vector<4x8x16xf32> to vector<4x8x1xf32>
    %28 = vector.extract_strided_slice %10 {offsets = [0, 0, 11], sizes = [4, 8, 1], strides = [1, 1, 1]} : vector<4x8x16xf32> to vector<4x8x1xf32>
    %29 = vector.extract_strided_slice %10 {offsets = [0, 0, 13], sizes = [4, 8, 1], strides = [1, 1, 1]} : vector<4x8x16xf32> to vector<4x8x1xf32>
    %30 = vector.extract_strided_slice %10 {offsets = [0, 0, 15], sizes = [4, 8, 1], strides = [1, 1, 1]} : vector<4x8x16xf32> to vector<4x8x1xf32>
    %31 = tpu.concatenate %23, %24, %25, %26, %27, %28, %29, %30 in 2 : vector<4x8x1xf32>, vector<4x8x1xf32>, vector<4x8x1xf32>, vector<4x8x1xf32>, vector<4x8x1xf32>, vector<4x8x1xf32>, vector<4x8x1xf32>, vector<4x8x1xf32> -> vector<4x8x8xf32>
    %c0_10 = arith.constant 0 : index
    %c1 = arith.constant 1 : index
    %c0_11 = arith.constant 0 : index
    %c0_12 = arith.constant 0 : index
    %c0_13 = arith.constant 0 : index
    %c0_14 = arith.constant 0 : index
    %32 = vector.load %arg3[%c0_10, %c1, %c0_11, %c0_12, %c0_13, %c0_14] : memref<1x4x1x4x8x8xf32, #tpu.memory_space<vmem>>, vector<1x1x1x4x8x8xf32>
    %33 = vector.shape_cast %32 : vector<1x1x1x4x8x8xf32> to vector<4x8x8xf32>
    %34 = vector.shape_cast %31 : vector<4x8x8xf32> to vector<1x1x1x4x8x8xf32>
    tpu.vector_store %arg3[%c0_10, %c1, %c0_11, %c0_12, %c0_13, %c0_14], %34 {strides = array<i32>} : memref<1x4x1x4x8x8xf32, #tpu.memory_space<vmem>>, vector<1x1x1x4x8x8xf32>,
    %35 = vector.extract_strided_slice %1 {offsets = [0, 1, 0], sizes = [4, 1, 16], strides = [1, 1, 1]} : vector<4x16x16xf32> to vector<4x1x16xf32>
    %36 = vector.extract_strided_slice %1 {offsets = [0, 3, 0], sizes = [4, 1, 16], strides = [1, 1, 1]} : vector<4x16x16xf32> to vector<4x1x16xf32>
    %37 = vector.extract_strided_slice %1 {offsets = [0, 5, 0], sizes = [4, 1, 16], strides = [1, 1, 1]} : vector<4x16x16xf32> to vector<4x1x16xf32>
    %38 = vector.extract_strided_slice %1 {offsets = [0, 7, 0], sizes = [4, 1, 16], strides = [1, 1, 1]} : vector<4x16x16xf32> to vector<4x1x16xf32>
    %39 = vector.extract_strided_slice %1 {offsets = [0, 9, 0], sizes = [4, 1, 16], strides = [1, 1, 1]} : vector<4x16x16xf32> to vector<4x1x16xf32>
    %40 = vector.extract_strided_slice %1 {offsets = [0, 11, 0], sizes = [4, 1, 16], strides = [1, 1, 1]} : vector<4x16x16xf32> to vector<4x1x16xf32>
    %41 = vector.extract_strided_slice %1 {offsets = [0, 13, 0], sizes = [4, 1, 16], strides = [1, 1, 1]} : vector<4x16x16xf32> to vector<4x1x16xf32>
    %42 = vector.extract_strided_slice %1 {offsets = [0, 15, 0], sizes = [4, 1, 16], strides = [1, 1, 1]} : vector<4x16x16xf32> to vector<4x1x16xf32>
    %43 = tpu.concatenate %35, %36, %37, %38, %39, %40, %41, %42 in 1 : vector<4x1x16xf32>, vector<4x1x16xf32>, vector<4x1x16xf32>, vector<4x1x16xf32>, vector<4x1x16xf32>, vector<4x1x16xf32>, vector<4x1x16xf32>, vector<4x1x16xf32> -> vector<4x8x16xf32>
    %44 = vector.extract_strided_slice %43 {offsets = [0, 0, 0], sizes = [4, 8, 1], strides = [1, 1, 1]} : vector<4x8x16xf32> to vector<4x8x1xf32>
    %45 = vector.extract_strided_slice %43 {offsets = [0, 0, 2], sizes = [4, 8, 1], strides = [1, 1, 1]} : vector<4x8x16xf32> to vector<4x8x1xf32>
    %46 = vector.extract_strided_slice %43 {offsets = [0, 0, 4], sizes = [4, 8, 1], strides = [1, 1, 1]} : vector<4x8x16xf32> to vector<4x8x1xf32>
    %47 = vector.extract_strided_slice %43 {offsets = [0, 0, 6], sizes = [4, 8, 1], strides = [1, 1, 1]} : vector<4x8x16xf32> to vector<4x8x1xf32>
    %48 = vector.extract_strided_slice %43 {offsets = [0, 0, 8], sizes = [4, 8, 1], strides = [1, 1, 1]} : vector<4x8x16xf32> to vector<4x8x1xf32>
    %49 = vector.extract_strided_slice %43 {offsets = [0, 0, 10], sizes = [4, 8, 1], strides = [1, 1, 1]} : vector<4x8x16xf32> to vector<4x8x1xf32>
    %50 = vector.extract_strided_slice %43 {offsets = [0, 0, 12], sizes = [4, 8, 1], strides = [1, 1, 1]} : vector<4x8x16xf32> to vector<4x8x1xf32>
    %51 = vector.extract_strided_slice %43 {offsets = [0, 0, 14], sizes = [4, 8, 1], strides = [1, 1, 1]} : vector<4x8x16xf32> to vector<4x8x1xf32>
    %52 = tpu.concatenate %44, %45, %46, %47, %48, %49, %50, %51 in 2 : vector<4x8x1xf32>, vector<4x8x1xf32>, vector<4x8x1xf32>, vector<4x8x1xf32>, vector<4x8x1xf32>, vector<4x8x1xf32>, vector<4x8x1xf32>, vector<4x8x1xf32> -> vector<4x8x8xf32>
    %c0_15 = arith.constant 0 : index
    %c2 = arith.constant 2 : index
    %c0_16 = arith.constant 0 : index
    %c0_17 = arith.constant 0 : index
    %c0_18 = arith.constant 0 : index
    %c0_19 = arith.constant 0 : index
    %53 = vector.load %arg3[%c0_15, %c2, %c0_16, %c0_17, %c0_18, %c0_19] : memref<1x4x1x4x8x8xf32, #tpu.memory_space<vmem>>, vector<1x1x1x4x8x8xf32>
    %54 = vector.shape_cast %53 : vector<1x1x1x4x8x8xf32> to vector<4x8x8xf32>
    %55 = vector.shape_cast %52 : vector<4x8x8xf32> to vector<1x1x1x4x8x8xf32>
    tpu.vector_store %arg3[%c0_15, %c2, %c0_16, %c0_17, %c0_18, %c0_19], %55 {strides = array<i32>} : memref<1x4x1x4x8x8xf32, #tpu.memory_space<vmem>>, vector<1x1x1x4x8x8xf32>,
    %56 = vector.extract_strided_slice %43 {offsets = [0, 0, 1], sizes = [4, 8, 1], strides = [1, 1, 1]} : vector<4x8x16xf32> to vector<4x8x1xf32>
    %57 = vector.extract_strided_slice %43 {offsets = [0, 0, 3], sizes = [4, 8, 1], strides = [1, 1, 1]} : vector<4x8x16xf32> to vector<4x8x1xf32>
    %58 = vector.extract_strided_slice %43 {offsets = [0, 0, 5], sizes = [4, 8, 1], strides = [1, 1, 1]} : vector<4x8x16xf32> to vector<4x8x1xf32>
    %59 = vector.extract_strided_slice %43 {offsets = [0, 0, 7], sizes = [4, 8, 1], strides = [1, 1, 1]} : vector<4x8x16xf32> to vector<4x8x1xf32>
    %60 = vector.extract_strided_slice %43 {offsets = [0, 0, 9], sizes = [4, 8, 1], strides = [1, 1, 1]} : vector<4x8x16xf32> to vector<4x8x1xf32>
    %61 = vector.extract_strided_slice %43 {offsets = [0, 0, 11], sizes = [4, 8, 1], strides = [1, 1, 1]} : vector<4x8x16xf32> to vector<4x8x1xf32>
    %62 = vector.extract_strided_slice %43 {offsets = [0, 0, 13], sizes = [4, 8, 1], strides = [1, 1, 1]} : vector<4x8x16xf32> to vector<4x8x1xf32>
    %63 = vector.extract_strided_slice %43 {offsets = [0, 0, 15], sizes = [4, 8, 1], strides = [1, 1, 1]} : vector<4x8x16xf32> to vector<4x8x1xf32>
    %64 = tpu.concatenate %56, %57, %58, %59, %60, %61, %62, %63 in 2 : vector<4x8x1xf32>, vector<4x8x1xf32>, vector<4x8x1xf32>, vector<4x8x1xf32>, vector<4x8x1xf32>, vector<4x8x1xf32>, vector<4x8x1xf32>, vector<4x8x1xf32> -> vector<4x8x8xf32>
    %c0_20 = arith.constant 0 : index
    %c3 = arith.constant 3 : index
    %c0_21 = arith.constant 0 : index
    %c0_22 = arith.constant 0 : index
    %c0_23 = arith.constant 0 : index
    %c0_24 = arith.constant 0 : index
    %65 = vector.load %arg3[%c0_20, %c3, %c0_21, %c0_22, %c0_23, %c0_24] : memref<1x4x1x4x8x8xf32, #tpu.memory_space<vmem>>, vector<1x1x1x4x8x8xf32>
    %66 = vector.shape_cast %65 : vector<1x1x1x4x8x8xf32> to vector<4x8x8xf32>
    %67 = vector.shape_cast %64 : vector<4x8x8xf32> to vector<1x1x1x4x8x8xf32>
    tpu.vector_store %arg3[%c0_20, %c3, %c0_21, %c0_22, %c0_23, %c0_24], %67 {strides = array<i32>} : memref<1x4x1x4x8x8xf32, #tpu.memory_space<vmem>>, vector<1x1x1x4x8x8xf32>,
    return
  }
  func.func @transform_0(%arg0: i32, %arg1: i32) -> (i32, i32, i32, i32, i32) {
    %c0_i32 = arith.constant 0 : i32
    %c0_i32_0 = arith.constant 0 : i32
    %c0_i32_1 = arith.constant 0 : i32
    %c0_i32_2 = arith.constant 0 : i32
    return %arg0, %arg1, %c0_i32, %c0_i32_0, %c0_i32_1 : i32, i32, i32, i32, i32
  }
  func.func @transform_1(%arg0: i32, %arg1: i32) -> (i32, i32, i32, i32, i32, i32) {
    %c0_i32 = arith.constant 0 : i32
    %c0_i32_0 = arith.constant 0 : i32
    %c0_i32_1 = arith.constant 0 : i32
    %c0_i32_2 = arith.constant 0 : i32
    %c0_i32_3 = arith.constant 0 : i32
    return %arg0, %c0_i32, %arg1, %c0_i32_0, %c0_i32_1, %c0_i32_2 : i32, i32, i32, i32, i32, i32
  }
}

</mosaic_0001>

<bundles_post_ra>
// kernel: _reorg_concat.1
= control target key start
LH: loop header
LB: loop body
LE: loop exit
PB: predicated region body
PF: predicated region fallthrough
CT: control target
= control target key end

     0   :  { %6 = vsyncpa [#allocation3], 0  ;;  %s1554_s0 = inlined_call_operand.hbm [shape: f32[2,1,4,16,16], index: 0, kind: input, shape index: {}]   ;;  %s1555_s1 = inlined_call_operand.vmem [shape: f32[2,4,1,4,8,8], index: 1, kind: output, shape index: {}]  }
   0x1   :  { %8 = vsyncpa [#allocation3 + $0x1], 0  ;;  %s936_s6 = smov 0   ;;  %s938_s7 = smov 0  }
   0x2   :  { %s940_s8 = smov 0   ;;  %s942_s9 = smov 0  }
   0x3   :  { %s944_s10 = smov 0   ;;  %s946_s11 = smov 0  }
   0x4 LB: > { %s743_s12 = sadd.s32 4294967295, %s913_s11   ;;  %s26_s13 = sadd.s32 1, %s909_s10  ;;  %s913_s11 = sphi %s946_s11, %s14_s11   ;;  %s909_s10 = sphi %s944_s10, %s1563_s10   ;;  %s905_s9 = sphi %s942_s9, %s1562_s9   ;;  %s901_s8 = sphi %s940_s8, %s1561_s8   ;;  %s897_s7 = sphi %s938_s7, %s1560_s7   ;;  %s893_s6 = sphi %s936_s6, %s1559_s6  }
   0x5   : > { %p28_p0 = scmp.ge.s32.totalorder %s26_s13, 2  ;;  %s35_s14 = sadd.s32 1, %s901_s8 }
   0x6   : > { %p42_p1 = scmp.ne.s32.totalorder %s901_s8, %s897_s7  ;;  %p43_p2 = scmp.eq.s32.totalorder %s913_s11, 0 }
   0x7   : > { %s1565_s13 = smov (%p28_p0, %s26_s13), 0  ;;  %p48_p4 = scmp.ne.s32.totalorder %s897_s7, %s893_s6 }
   0x8   : > { %p972_p3 = por %p43_p2, %p42_p1  ;;  %s30_s16 = ssub.s32 %s909_s10, %s1565_s13 }
   0x9   : > { %p49_p5 = scmp.eq.s32.totalorder %s743_s12, 0  ;;  %p33_p6 = scmp.eq.s32.totalorder %s30_s16, 0 }
   0xa   : > { %p776_p8 = scmp.lt.s32.totalorder %s913_s11, 2  ;;  %s100_s19 = sand.u32 1, %s901_s8  }
   0xb   : > { %p979_p7 = por %p49_p5, %p48_p4  ;;  %s768_s20 = sshll.u32 %s909_s10, 10 }
   0xc   : > { %s985_s18 = scalar_select %p33_p6, %s901_s8, %s35_s14  }
   0xd   : > { %s747_s21 = sshll.u32 %s100_s19, 6  ;;  %s112_s24 = scalar_lea.hbm %s1554_s0, %s768_s20 }
   0xe   : > { %s104_s25 = scalar_lea.vmem [#allocation2], %s747_s21  ;;  %p994_p9 = pnand %p776_p8, %p972_p3 }
   0xf   : > { %s113_s26 = sshll.u32 %s104_s25, 4  ;;  %s101_s28 = scalar_lea.sflag [#allocation3], %s100_s19  ;;  %s114_s26 = int_to_ptr.vmem [resolvable:$true] %s113_s26 }
  0x10   : > { %p837_p10 = pneg %p994_p9  ;;  %s848_s29 = scalar_lea.vmem %s114_s26, 1024 }
  0x11   : > { %p849_p11 = scmp.ne.s32.totalorder %s114_s26, %s848_s29  ;;  %s915_s30 = smov [#allocation2]  }
  0x12   : > { %s853_s2 = sshll.u32 %s915_s30, 4  ;;  %s854_s2 = int_to_ptr.vmem [resolvable:$false] %s853_s2 }
  0x13   : > { %p851_p12 = pnand %p849_p11, %p837_p10  ;;  %s855_s3 = scalar_lea.vmem %s854_s2, 2048 }
  0x14   : > { %p856_p0 = scmp.lt.s32.totalorder %s114_s26, %s854_s2  ;;  %p857_p1 = scmp.lt.s32.totalorder %s855_s3, %s848_s29 }
  0x15   : > { %p852_p13 = pneg %p851_p12 }
  0x16   : > { %p858_p2 = por %p857_p1, %p856_p0 }
  0x18   : > { %p859_p3 = pnand %p858_p2, %p852_p13 }
  0x1a   : > { %862 = shalt.err (!%p859_p3)
}
  0x1b   : > { %s916_s4 = smov 128   ;;  %s917_s5 = smov 8  }
  0x1c   : > { %775 = dma.hbm_to_vmem [thread:$0]  (!%p994_p9), %s112_s24, 1024, %s114_s26, %s101_s28, %s916_s4, %s916_s4, %s917_s5  }
  0x1d   : > { %p750_p4 = scmp.ge.s32.totalorder %s913_s11, 1  ;;  %p121_p5 = scmp.lt.s32.totalorder %s913_s11, 3 }
  0x1f   : > { %p122_p6 = pnand %p750_p4, %p121_p5 }
  0x20   : > { %s127_s6 = sand.u32 (!%p122_p6), 1, %s897_s7  }
  0x21   : > { %125 = sbr.rel (%p122_p6) target bundleno = 296 (0x128), region = 24  ;;  %s751_s12 = sshll.u32 (!%p122_p6), %s127_s6, 6 }
  0x22   : > { %s128_s14 = scalar_lea.sflag (!%p122_p6), [#allocation3], %s127_s6  ;;  %s1005_s15 = scalar_lea.vmem (!%p122_p6), [#allocation2], %s751_s12 }
  0x26   : > { %888 = dma.done.wait (%p979_p7), %s128_s14, 1024  }
  0x27   : > { %890 = vsyncadd (%p979_p7), %s128_s14, 4294966272  ;;  %vm235_vm0 = vcmask 1040384   ;;  %vm240_vm1 = vcmask 1041408   ;;  %vm245_vm2 = vcmask 1042432   ;;  %vm250_vm3 = vcmask 1043456   ;;  %v1012_v0 = vld [vmem:[%s1005_s15 + $0x20] sm:$0xff] }
  0x28   : > { %v1015_v1 = vld [vmem:[%s1005_s15 + $0x28] sm:$0xff]  ;;  %vm255_vm4 = vcmask 1044480   ;;  %vm260_vm5 = vcmask 1045504   ;;  %vm265_vm6 = vcmask 1046528   ;;  %v1018_v2 = vld [vmem:[%s1005_s15] sm:$0xff]  ;;  %v177_v3 = vrot.slane %v1012_v0, 1 }
  0x29   : > { %v185_v4 = vrot.slane %v1012_v0, 2  ;;  %v193_v5 = vrot.slane %v1012_v0, 3  ;;  %v205_v6 = vrot.slane %v1015_v1, 4  ;;  %v1025_v7 = vld [vmem:[%s1005_s15 + $0x8] sm:$0xff]  ;;  %v213_v8 = vrot.slane %v1015_v1, 5  ;;  %v1032_v12 = vld [vmem:[%s1005_s15 + $0x30] sm:$0xff] }
  0x2a   : > { %v221_v9 = vrot.slane %v1015_v1, 6  ;;  %v229_v10 = vrot.slane %v1015_v1, 7  ;;  %v175_v11 = vrot.slane %v1018_v2, 1  ;;  %v238_v13 = vsel %vm235_vm0, %v1012_v0, %v177_v3  ;;  %v1042_v17 = vld [vmem:[%s1005_s15 + $0x38] sm:$0xff]  ;;  %v165_v30 = vld [vmem:[%s1005_s15 + $0x10] sm:$0xff]  ;;  %s918_s16 = smov 127  }
  0x2b   : > { %v183_v14 = vrot.slane %v1018_v2, 2  ;;  %v191_v15 = vrot.slane %v1018_v2, 3  ;;  %v203_v16 = vrot.slane %v1025_v7, 4  ;;  %v243_v18 = vsel %vm240_vm1, %v238_v13, %v185_v4  ;;  %v166_v39 = vld [vmem:[%s1005_s15 + $0x18] sm:$0xff]  ;;  %s919_s17 = smov 126   ;;  %s920_s19 = smov 125  }
  0x2c   : > { %v211_v19 = vrot.slane %v1025_v7, 5  ;;  %v219_v20 = vrot.slane %v1025_v7, 6  ;;  %v227_v21 = vrot.slane %v1025_v7, 7  ;;  %v248_v22 = vsel %vm245_vm2, %v243_v18, %v193_v5  ;;  %s921_s20 = smov 124   ;;  %s922_s21 = smov 123  }
  0x2d   : > { %v236_v23 = vsel %vm235_vm0, %v1018_v2, %v175_v11  ;;  %v178_v24 = vrot.slane %v1032_v12, 1  ;;  %v186_v25 = vrot.slane %v1032_v12, 2  ;;  %v253_v26 = vsel %vm250_vm3, %v248_v22, %v205_v6  ;;  %s923_s22 = smov 122   ;;  %s924_s23 = smov 121  }
  0x2e   : > { %v241_v27 = vsel %vm240_vm1, %v236_v23, %v183_v14  ;;  %v194_v28 = vrot.slane %v1032_v12, 3  ;;  %v206_v29 = vrot.slane %v1042_v17, 4  ;;  %v258_v31 = vsel %vm255_vm4, %v253_v26, %v213_v8  ;;  %s925_s24 = smov 120   ;;  %p154_p7 = scmp.lt.s32.totalorder %s905_s9, 1 }
  0x2f   : > { %v246_v32 = vsel %vm245_vm2, %v241_v27, %v191_v15  ;;  %v214_v33 = vrot.slane %v1042_v17, 5  ;;  %v222_v34 = vrot.slane %v1042_v17, 6  ;;  %v263_v35 = vsel %vm260_vm5, %v258_v31, %v221_v9 }
  0x30   : > { %v251_v36 = vsel %vm250_vm3, %v246_v32, %v203_v16  ;;  %v230_v37 = vrot.slane %v1042_v17, 7  ;;  %v239_v38 = vsel %vm235_vm0, %v1032_v12, %v178_v24  ;;  %v1079_v40 = vsel %vm265_vm6, %v263_v35, %v229_v10  ;;  %s1567_s9 = smov (!%p154_p7, %s905_s9), 1 }
  0x31   : > { %v256_v41 = vsel %vm255_vm4, %v251_v36, %v211_v19  ;;  %v244_v42 = vsel %vm240_vm1, %v239_v38, %v186_v25  ;;  %v176_v43 = vrot.slane %v165_v30, 1  ;;  %278 = vrot.lane.b32.xlu1 %v1079_v40, %s918_s16  ;;  %v184_v46 = vrot.slane %v165_v30, 2  ;;  %s769_s25 = sshll.u32 %s1567_s9, 7 }
  0x32   : > { %v261_v44 = vsel %vm260_vm5, %v256_v41, %v219_v20  ;;  %v249_v45 = vsel %vm245_vm2, %v244_v42, %v194_v28  ;;  %v192_v47 = vrot.slane %v165_v30, 3  ;;  %v204_v50 = vrot.slane %v166_v39, 4  ;;  %s1344_s9 = scalar_lea.vmem %s1555_s1, %s769_s25 }
  0x33   : > { %v1094_v48 = vsel %vm265_vm6, %v261_v44, %v227_v21  ;;  %v254_v49 = vsel %vm250_vm3, %v249_v45, %v206_v29  ;;  %v212_v51 = vrot.slane %v166_v39, 5  ;;  %v220_v53 = vrot.slane %v166_v39, 6 }
  0x34   : > { %274 = vrot.lane.b32.xlu0 %v1094_v48, %s918_s16  ;;  %v259_v52 = vsel %vm255_vm4, %v254_v49, %v214_v33  ;;  %v228_v54 = vrot.slane %v166_v39, 7  ;;  %v237_v55 = vsel %vm235_vm0, %v165_v30, %v176_v43  ;;  %v444_v58 = vrot.slane %v165_v30, 4 }
  0x35   : > { %v264_v56 = vsel %vm260_vm5, %v259_v52, %v222_v34  ;;  %v242_v57 = vsel %vm240_vm1, %v237_v55, %v184_v46  ;;  %v452_v59 = vsel %vm235_vm0, %v176_v43, %v184_v46  ;;  %v443_v63 = vrot.slane %v1018_v2, 4 }
  0x36   : > { %v1105_v60 = vsel %vm265_vm6, %v264_v56, %v230_v37  ;;  %v247_v61 = vsel %vm245_vm2, %v242_v57, %v192_v47  ;;  %v456_v62 = vsel %vm240_vm1, %v452_v59, %v192_v47  ;;  %v451_v16 = vsel %vm235_vm0, %v175_v11, %v183_v14 }
  0x37   : > { %280 = vrot.lane.b32.xlu1 %v1105_v60, %s918_s16  ;;  %v252_v6 = vsel %vm250_vm3, %v247_v61, %v204_v50  ;;  %v460_v13 = vsel %vm245_vm2, %v456_v62, %v444_v58  ;;  %v446_v18 = vrot.slane %v1032_v12, 4  ;;  %v455_v26 = vsel %vm240_vm1, %v451_v16, %v191_v15 }
  0x38   : > { %v257_v22 = vsel %vm255_vm4, %v252_v6, %v212_v51  ;;  %v464_v23 = vsel %vm250_vm3, %v460_v13, %v212_v51  ;;  %v454_v27 = vsel %vm235_vm0, %v178_v24, %v186_v25  ;;  %v459_v30 = vsel %vm245_vm2, %v455_v26, %v443_v63 }
  0x39   : > { %v262_v2 = vsel %vm260_vm5, %v257_v22, %v220_v53  ;;  %v468_v29 = vsel %vm255_vm4, %v464_v23, %v220_v53  ;;  %v458_v31 = vsel %vm240_vm1, %v454_v27, %v194_v28  ;;  %v463_v14 = vsel %vm250_vm3, %v459_v30, %v211_v19 }
  0x3a   : > { %v1125_v11 = vsel %vm265_vm6, %v262_v2, %v228_v54  ;;  %v472_v12 = vsel %vm260_vm5, %v468_v29, %v228_v54  ;;  %v462_v15 = vsel %vm245_vm2, %v458_v31, %v446_v18  ;;  %v467_v25 = vsel %vm255_vm4, %v463_v14, %v219_v20 }
  0x3b   : > { %276 = vrot.lane.b32.xlu0 %v1125_v11, %s918_s16  ;;  %288 = vrot.lane.b32.xlu1 %v1125_v11, %s919_s17  ;;  %v1137_v24 = vsel %vm265_vm6, %v472_v12, %v166_v39  ;;  %v466_v28 = vsel %vm250_vm3, %v462_v15, %v214_v33  ;;  %v445_v19 = vrot.slane %v1012_v0, 4  ;;  %v471_v32 = vsel %vm260_vm5, %v467_v25, %v227_v21 }
  0x3c   : > { %v470_v35 = vsel %vm255_vm4, %v466_v28, %v222_v34  ;;  %v453_v36 = vsel %vm235_vm0, %v177_v3, %v185_v4  ;;  %v1155_v38 = vsel %vm265_vm6, %v471_v32, %v1025_v7  ;;  %vm363_vm7 = vcmask 15360  }
  0x3d   : > { %v474_v20 = vsel %vm260_vm5, %v470_v35, %v230_v37  ;;  %v457_v33 = vsel %vm240_vm1, %v453_v36, %v193_v5  ;;  %vm358_vm8 = vcmask 7168   ;;  %vm368_vm9 = vcmask 23552  }
  0x3e   : > { %v1163_v21 = vsel %vm265_vm6, %v474_v20, %v1042_v17  ;;  %v461_v34 = vsel %vm245_vm2, %v457_v33, %v445_v19  ;;  %vm373_vm10 = vcmask 31744   ;;  %vm378_vm11 = vcmask 39936  }
  0x3f   : > { %286 = vrot.lane.b32.xlu0 %v1094_v48, %s919_s17  ;;  %292 = vrot.lane.b32.xlu1 %v1105_v60, %s919_s17  ;;  %v465_v3 = vsel %vm250_vm3, %v461_v34, %v213_v8  ;;  %vm383_vm12 = vcmask 48128   ;;  %vm388_vm13 = vcmask 56320   ;;  %vm393_vm14 = vcmask 64512  }
  0x40   : > { %v469_v0 = vsel %vm255_vm4, %v465_v3, %v221_v9 }
  0x41   : > { %v473_v4 = vsel %vm260_vm5, %v469_v0, %v229_v10 }
  0x42   : > { %v1181_v5 = vsel %vm265_vm6, %v473_v4, %v1015_v1 }
  0x43   : > { %290 = vrot.lane.b32.xlu0 %v1079_v40, %s919_s17  ;;  %300 = vrot.lane.b32.xlu1 %v1125_v11, %s920_s19 }
  0x47   : > { %298 = vrot.lane.b32.xlu0 %v1094_v48, %s920_s19  ;;  %304 = vrot.lane.b32.xlu1 %v1105_v60, %s920_s19 }
  0x4b   : > { %302 = vrot.lane.b32.xlu0 %v1079_v40, %s920_s19  ;;  %312 = vrot.lane.b32.xlu1 %v1125_v11, %s921_s20 }
  0x4f   : > { %310 = vrot.lane.b32.xlu0 %v1094_v48, %s921_s20  ;;  %316 = vrot.lane.b32.xlu1 %v1105_v60, %s921_s20 }
  0x53   : > { %314 = vrot.lane.b32.xlu0 %v1079_v40, %s921_s20  ;;  %324 = vrot.lane.b32.xlu1 %v1125_v11, %s922_s21 }
  0x57   : > { %322 = vrot.lane.b32.xlu0 %v1094_v48, %s922_s21  ;;  %328 = vrot.lane.b32.xlu1 %v1105_v60, %s922_s21 }
  0x5b   : > { %326 = vrot.lane.b32.xlu0 %v1079_v40, %s922_s21  ;;  %336 = vrot.lane.b32.xlu1 %v1125_v11, %s923_s22 }
  0x5f   : > { %334 = vrot.lane.b32.xlu0 %v1094_v48, %s923_s22  ;;  %340 = vrot.lane.b32.xlu1 %v1105_v60, %s923_s22 }
  0x63   : > { %338 = vrot.lane.b32.xlu0 %v1079_v40, %s923_s22  ;;  %348 = vrot.lane.b32.xlu1 %v1125_v11, %s924_s23 }
  0x67   : > { %346 = vrot.lane.b32.xlu0 %v1094_v48, %s924_s23  ;;  %352 = vrot.lane.b32.xlu1 %v1105_v60, %s924_s23 }
  0x6b   : > { %350 = vrot.lane.b32.xlu0 %v1079_v40, %s924_s23  ;;  %400 = vrot.lane.b32.xlu1 %v1125_v11, %s925_s24 }
  0x6f   : > { %398 = vrot.lane.b32.xlu0 %v1094_v48, %s925_s24  ;;  %404 = vrot.lane.b32.xlu1 %v1105_v60, %s925_s24 }
  0x73   : > { %402 = vrot.lane.b32.xlu0 %v1079_v40, %s925_s24  ;;  %485 = vrot.lane.b32.xlu1 %v1137_v24, %s918_s16 }
  0x77   : > { %483 = vrot.lane.b32.xlu0 %v1155_v38, %s918_s16  ;;  %489 = vrot.lane.b32.xlu1 %v1163_v21, %s918_s16 }
  0x7b   : > { %487 = vrot.lane.b32.xlu0 %v1181_v5, %s918_s16  ;;  %497 = vrot.lane.b32.xlu1 %v1137_v24, %s919_s17 }
  0x7f   : > { %495 = vrot.lane.b32.xlu0 %v1155_v38, %s919_s17  ;;  %501 = vrot.lane.b32.xlu1 %v1163_v21, %s919_s17 }
  0x83   : > { %499 = vrot.lane.b32.xlu0 %v1181_v5, %s919_s17  ;;  %509 = vrot.lane.b32.xlu1 %v1137_v24, %s920_s19 }
  0x87   : > { %507 = vrot.lane.b32.xlu0 %v1155_v38, %s920_s19  ;;  %513 = vrot.lane.b32.xlu1 %v1163_v21, %s920_s19 }
  0x8b   : > { %511 = vrot.lane.b32.xlu0 %v1181_v5, %s920_s19  ;;  %521 = vrot.lane.b32.xlu1 %v1137_v24, %s921_s20 }
  0x8f   : > { %519 = vrot.lane.b32.xlu0 %v1155_v38, %s921_s20  ;;  %525 = vrot.lane.b32.xlu1 %v1163_v21, %s921_s20 }
  0x93   : > { %523 = vrot.lane.b32.xlu0 %v1181_v5, %s921_s20  ;;  %533 = vrot.lane.b32.xlu1 %v1137_v24, %s922_s21 }
  0x97   : > { %531 = vrot.lane.b32.xlu0 %v1155_v38, %s922_s21  ;;  %537 = vrot.lane.b32.xlu1 %v1163_v21, %s922_s21 }
  0x9b   : > { %535 = vrot.lane.b32.xlu0 %v1181_v5, %s922_s21  ;;  %545 = vrot.lane.b32.xlu1 %v1137_v24, %s923_s22 }
  0x9f   : > { %543 = vrot.lane.b32.xlu0 %v1155_v38, %s923_s22  ;;  %549 = vrot.lane.b32.xlu1 %v1163_v21, %s923_s22 }
  0xa3   : > { %547 = vrot.lane.b32.xlu0 %v1181_v5, %s923_s22  ;;  %557 = vrot.lane.b32.xlu1 %v1137_v24, %s924_s23  ;;  %v1283_v1 = vpop.permute.xlu1 %278 }
  0xa4   : > { %v361_v29 = vsel %vm358_vm8, %v1079_v40, %v1283_v1 }
  0xa6   : > { %v1287_v7 = vpop.permute.xlu0 %274 }
  0xa7   : > { %555 = vrot.lane.b32.xlu0 %v1155_v38, %s924_s23  ;;  %561 = vrot.lane.b32.xlu1 %v1163_v21, %s924_s23  ;;  %v359_v62 = vsel %vm358_vm8, %v1094_v48, %v1287_v7 }
  0xa9   : > { %v1291_v8 = vpop.permute.xlu1 %280 }
  0xaa   : > { %v362_v63 = vsel %vm358_vm8, %v1105_v60, %v1291_v8 }
  0xab   : > { %559 = vrot.lane.b32.xlu0 %v1181_v5, %s924_s23  ;;  %602 = vrot.lane.b32.xlu1 %v1137_v24, %s925_s24 }
  0xad   : > { %v277_v9 = vpop.permute.xlu0 %276  ;;  %v289_v10 = vpop.permute.xlu1 %288 }
  0xae   : > { %v360_v55 = vsel %vm358_vm8, %v1125_v11, %v277_v9  ;;  %v411_v30 = vsel %vm358_vm8, %v277_v9, %v289_v10 }
  0xaf   : > { %600 = vrot.lane.b32.xlu0 %v1155_v38, %s925_s24  ;;  %606 = vrot.lane.b32.xlu1 %v1163_v21, %s925_s24  ;;  %v365_v56 = vsel %vm363_vm7, %v360_v55, %v289_v10 }
  0xb1   : > { %v1301_v17 = vpop.permute.xlu0 %286  ;;  %v1303_v37 = vpop.permute.xlu1 %292 }
  0xb2   : > { %v364_v13 = vsel %vm363_vm7, %v359_v62, %v1301_v17  ;;  %v367_v16 = vsel %vm363_vm7, %v362_v63, %v1303_v37  ;;  %v410_v34 = vsel %vm358_vm8, %v1287_v7, %v1301_v17  ;;  %v413_v3 = vsel %vm358_vm8, %v1291_v8, %v1303_v37 }
  0xb3   : > { %604 = vrot.lane.b32.xlu0 %v1181_v5, %s925_s24 }
  0xb5   : > { %v1307_v39 = vpop.permute.xlu0 %290  ;;  %v301_v41 = vpop.permute.xlu1 %300 }
  0xb6   : > { %v370_v59 = vsel %vm368_vm9, %v365_v56, %v301_v41  ;;  %v366_v12 = vsel %vm363_vm7, %v361_v29, %v1307_v39  ;;  %v415_v14 = vsel %vm363_vm7, %v411_v30, %v301_v41 }
  0xb9   : > { %v1309_v42 = vpop.permute.xlu0 %298  ;;  %v1311_v43 = vpop.permute.xlu1 %304 }
  0xba   : > { %v369_v60 = vsel %vm368_vm9, %v364_v13, %v1309_v42  ;;  %v372_v23 = vsel %vm368_vm9, %v367_v16, %v1311_v43  ;;  %v414_v9 = vsel %vm363_vm7, %v410_v34, %v1309_v42  ;;  %v417_v10 = vsel %vm363_vm7, %v413_v3, %v1311_v43 }
  0xbd   : > { %v1313_v44 = vpop.permute.xlu0 %302  ;;  %v313_v45 = vpop.permute.xlu1 %312 }
  0xbe   : > { %v375_v61 = vsel %vm373_vm10, %v370_v59, %v313_v45  ;;  %v371_v19 = vsel %vm368_vm9, %v366_v12, %v1313_v44  ;;  %v419_v32 = vsel %vm368_vm9, %v415_v14, %v313_v45 }
  0xc1   : > { %v1315_v46 = vpop.permute.xlu0 %310  ;;  %v1317_v47 = vpop.permute.xlu1 %316 }
  0xc2   : > { %v374_v27 = vsel %vm373_vm10, %v369_v60, %v1315_v46  ;;  %v377_v2 = vsel %vm373_vm10, %v372_v23, %v1317_v47  ;;  %v418_v8 = vsel %vm368_vm9, %v414_v9, %v1315_v46  ;;  %v421_v37 = vsel %vm368_vm9, %v417_v10, %v1317_v47 }
  0xc3   : > { %v412_v46 = vsel %vm358_vm8, %v1283_v1, %v1307_v39 }
  0xc5   : > { %v1319_v49 = vpop.permute.xlu0 %314  ;;  %v325_v50 = vpop.permute.xlu1 %324 }
  0xc6   : > { %v380_v6 = vsel %vm378_vm11, %v375_v61, %v325_v50  ;;  %v376_v20 = vsel %vm373_vm10, %v371_v19, %v1319_v49  ;;  %v423_v33 = vsel %vm373_vm10, %v419_v32, %v325_v50 }
  0xc9   : > { %v1321_v51 = vpop.permute.xlu0 %322  ;;  %v1323_v52 = vpop.permute.xlu1 %328 }
  0xca   : > { %v379_v31 = vsel %vm378_vm11, %v374_v27, %v1321_v51  ;;  %v382_v11 = vsel %vm378_vm11, %v377_v2, %v1323_v52  ;;  %v422_v42 = vsel %vm373_vm10, %v418_v8, %v1321_v51  ;;  %v425_v43 = vsel %vm373_vm10, %v421_v37, %v1323_v52 }
  0xcb   : > { %v416_v51 = vsel %vm363_vm7, %v412_v46, %v1313_v44 }
  0xcc   : > { %v420_v62 = vsel %vm368_vm9, %v416_v51, %v1319_v49 }
  0xcd   : > { %v1326_v53 = vpop.permute.xlu0 %326  ;;  %v337_v54 = vpop.permute.xlu1 %336 }
  0xce   : > { %v385_v48 = vsel %vm383_vm12, %v380_v6, %v337_v54  ;;  %v381_v0 = vsel %vm378_vm11, %v376_v20, %v1326_v53  ;;  %v427_v4 = vsel %vm378_vm11, %v423_v33, %v337_v54  ;;  %v424_v39 = vsel %vm373_vm10, %v420_v62, %v1326_v53 }
  0xd1   : > { %v335_v57 = vpop.permute.xlu0 %334  ;;  %v341_v58 = vpop.permute.xlu1 %340 }
  0xd2   : > { %v384_v15 = vsel %vm383_vm12, %v379_v31, %v335_v57  ;;  %v387_v25 = vsel %vm383_vm12, %v382_v11, %v341_v58  ;;  %v426_v47 = vsel %vm378_vm11, %v422_v42, %v335_v57  ;;  %v429_v55 = vsel %vm378_vm11, %v425_v43, %v341_v58 }
  0xd5   : > { %v339_v18 = vpop.permute.xlu0 %338  ;;  %v349_v22 = vpop.permute.xlu1 %348 }
  0xd6   : > { %v390_v26 = vsel %vm388_vm13, %v385_v48, %v349_v22  ;;  %v386_v41 = vsel %vm383_vm12, %v381_v0, %v339_v18  ;;  %v431_v7 = vsel %vm383_vm12, %v427_v4, %v349_v22  ;;  %v428_v44 = vsel %vm378_vm11, %v424_v39, %v339_v18 }
  0xd7   : > { %395 = vst.msk [vmem:[%s1344_s9 + $0x8] sm:$0xff] %vm393_vm14, %v390_v26 }
  0xd9   : > { %v347_v40 = vpop.permute.xlu0 %346  ;;  %v353_v28 = vpop.permute.xlu1 %352 }
  0xda   : > { %v389_v35 = vsel %vm388_vm13, %v384_v15, %v347_v40  ;;  %v392_v36 = vsel %vm388_vm13, %v387_v25, %v353_v28  ;;  %v430_v56 = vsel %vm383_vm12, %v426_v47, %v347_v40  ;;  %v433_v52 = vsel %vm383_vm12, %v429_v55, %v353_v28 }
  0xdb   : > { %394 = vst.msk [vmem:[%s1344_s9] sm:$0xff] %vm393_vm14, %v389_v35  ;;  %397 = vst.msk [vmem:[%s1344_s9 + $0x18] sm:$0xff] %vm393_vm14, %v392_v36 }
  0xdd   : > { %v351_v17 = vpop.permute.xlu0 %350  ;;  %v401_v45 = vpop.permute.xlu1 %400 }
  0xde   : > { %v391_v50 = vsel %vm388_vm13, %v386_v41, %v351_v17  ;;  %v435_v54 = vsel %vm388_vm13, %v431_v7, %v401_v45  ;;  %v432_v57 = vsel %vm383_vm12, %v428_v44, %v351_v17 }
  0xdf   : > { %396 = vst.msk [vmem:[%s1344_s9 + $0x10] sm:$0xff] %vm393_vm14, %v391_v50  ;;  %755 = vst.msk [vmem:[%s1344_s9 + $0x28] sm:$0xff] %vm393_vm14, %v435_v54 }
  0xe1   : > { %v399_v59 = vpop.permute.xlu0 %398  ;;  %v405_v61 = vpop.permute.xlu1 %404 }
  0xe2   : > { %v434_v63 = vsel %vm388_vm13, %v430_v56, %v399_v59  ;;  %v437_v1 = vsel %vm388_vm13, %v433_v52, %v405_v61 }
  0xe3   : > { %754 = vst.msk [vmem:[%s1344_s9 + $0x20] sm:$0xff] %vm393_vm14, %v434_v63  ;;  %757 = vst.msk [vmem:[%s1344_s9 + $0x38] sm:$0xff] %vm393_vm14, %v437_v1 }
  0xe5   : > { %v403_v58 = vpop.permute.xlu0 %402  ;;  %v486_v6 = vpop.permute.xlu1 %485 }
  0xe6   : > { %v436_v13 = vsel %vm388_vm13, %v432_v57, %v403_v58  ;;  %v568_v28 = vsel %vm358_vm8, %v1137_v24, %v486_v6 }
  0xe7   : > { %756 = vst.msk [vmem:[%s1344_s9 + $0x30] sm:$0xff] %vm393_vm14, %v436_v13 }
  0xe9   : > { %v484_v49 = vpop.permute.xlu0 %483  ;;  %v490_v16 = vpop.permute.xlu1 %489 }
  0xea   : > { %v567_v33 = vsel %vm358_vm8, %v1155_v38, %v484_v49  ;;  %v570_v34 = vsel %vm358_vm8, %v1163_v21, %v490_v16 }
  0xed   : > { %v1440_v48 = vpop.permute.xlu0 %487  ;;  %v498_v22 = vpop.permute.xlu1 %497 }
  0xee   : > { %v572_v19 = vsel %vm363_vm7, %v568_v28, %v498_v22  ;;  %v569_v45 = vsel %vm358_vm8, %v1181_v5, %v1440_v48  ;;  %v613_v8 = vsel %vm358_vm8, %v486_v6, %v498_v22 }
  0xf1   : > { %v496_v53 = vpop.permute.xlu0 %495  ;;  %v502_v60 = vpop.permute.xlu1 %501 }
  0xf2   : > { %v571_v0 = vsel %vm363_vm7, %v567_v33, %v496_v53  ;;  %v574_v24 = vsel %vm363_vm7, %v570_v34, %v502_v60  ;;  %v612_v62 = vsel %vm358_vm8, %v484_v49, %v496_v53  ;;  %v615_v63 = vsel %vm358_vm8, %v490_v16, %v502_v60 }
  0xf5   : > { %v1442_v23 = vpop.permute.xlu0 %499  ;;  %v510_v26 = vpop.permute.xlu1 %509 }
  0xf6   : > { %v576_v36 = vsel %vm368_vm9, %v572_v19, %v510_v26  ;;  %v573_v54 = vsel %vm363_vm7, %v569_v45, %v1442_v23  ;;  %v617_v42 = vsel %vm363_vm7, %v613_v8, %v510_v26 }
  0xf9   : > { %v508_v27 = vpop.permute.xlu0 %507  ;;  %v514_v18 = vpop.permute.xlu1 %513 }
  0xfa   : > { %v575_v41 = vsel %vm368_vm9, %v571_v0, %v508_v27  ;;  %v578_v7 = vsel %vm368_vm9, %v574_v24, %v514_v18  ;;  %v616_v44 = vsel %vm363_vm7, %v612_v62, %v508_v27  ;;  %v619_v57 = vsel %vm363_vm7, %v615_v63, %v514_v18 }
  0xfb   : > { %v614_v18 = vsel %vm358_vm8, %v1440_v48, %v1442_v23 }
  0xfd   : > { %v1444_v2 = vpop.permute.xlu0 %511  ;;  %v522_v29 = vpop.permute.xlu1 %521 }
  0xfe   : > { %v580_v20 = vsel %vm373_vm10, %v576_v36, %v522_v29  ;;  %v577_v5 = vsel %vm368_vm9, %v573_v54, %v1444_v2  ;;  %v621_v51 = vsel %vm368_vm9, %v617_v42, %v522_v29 }
 0x101   : > { %v520_v30 = vpop.permute.xlu0 %519  ;;  %v526_v31 = vpop.permute.xlu1 %525 }
 0x102   : > { %v579_v38 = vsel %vm373_vm10, %v575_v41, %v520_v30  ;;  %v582_v21 = vsel %vm373_vm10, %v578_v7, %v526_v31  ;;  %v620_v49 = vsel %vm368_vm9, %v616_v44, %v520_v30  ;;  %v623_v16 = vsel %vm368_vm9, %v619_v57, %v526_v31 }
 0x103   : > { %v618_v31 = vsel %vm363_vm7, %v614_v18, %v1444_v2 }
 0x105   : > { %v1446_v11 = vpop.permute.xlu0 %523  ;;  %v534_v12 = vpop.permute.xlu1 %533 }
 0x106   : > { %v584_v3 = vsel %vm378_vm11, %v580_v20, %v534_v12  ;;  %v581_v59 = vsel %vm373_vm10, %v577_v5, %v1446_v11  ;;  %v625_v61 = vsel %vm373_vm10, %v621_v51, %v534_v12  ;;  %v622_v28 = vsel %vm368_vm9, %v618_v31, %v1446_v11 }
 0x109   : > { %v532_v14 = vpop.permute.xlu0 %531  ;;  %v538_v15 = vpop.permute.xlu1 %537 }
 0x10a   : > { %v583_v37 = vsel %vm378_vm11, %v579_v38, %v532_v14  ;;  %v586_v50 = vsel %vm378_vm11, %v582_v21, %v538_v15  ;;  %v624_v26 = vsel %vm373_vm10, %v620_v49, %v532_v14  ;;  %v627_v27 = vsel %vm373_vm10, %v623_v16, %v538_v15 }
 0x10d   : > { %v1448_v25 = vpop.permute.xlu0 %535  ;;  %v546_v40 = vpop.permute.xlu1 %545 }
 0x10e   : > { %v588_v4 = vsel %vm383_vm12, %v584_v3, %v546_v40  ;;  %v585_v1 = vsel %vm378_vm11, %v581_v59, %v1448_v25  ;;  %v629_v39 = vsel %vm378_vm11, %v625_v61, %v546_v40  ;;  %v626_v23 = vsel %vm373_vm10, %v622_v28, %v1448_v25 }
 0x111   : > { %v544_v32 = vpop.permute.xlu0 %543  ;;  %v550_v35 = vpop.permute.xlu1 %549 }
 0x112   : > { %v587_v43 = vsel %vm383_vm12, %v583_v37, %v544_v32  ;;  %v590_v46 = vsel %vm383_vm12, %v586_v50, %v550_v35  ;;  %v628_v29 = vsel %vm378_vm11, %v624_v26, %v544_v32  ;;  %v631_v30 = vsel %vm378_vm11, %v627_v27, %v550_v35 }
 0x115   : > { %v548_v9 = vpop.permute.xlu0 %547  ;;  %v558_v10 = vpop.permute.xlu1 %557 }
 0x116   : > { %v592_v17 = vsel %vm388_vm13, %v588_v4, %v558_v10  ;;  %v589_v58 = vsel %vm383_vm12, %v585_v1, %v548_v9  ;;  %v633_v6 = vsel %vm383_vm12, %v629_v39, %v558_v10  ;;  %v630_v2 = vsel %vm378_vm11, %v626_v23, %v548_v9 }
 0x117   : > { %759 = vst.msk [vmem:[%s1344_s9 + $0x48] sm:$0xff] %vm393_vm14, %v592_v17 }
 0x119   : > { %v556_v47 = vpop.permute.xlu0 %555  ;;  %v562_v55 = vpop.permute.xlu1 %561 }
 0x11a   : > { %v591_v56 = vsel %vm388_vm13, %v587_v43, %v556_v47  ;;  %v594_v52 = vsel %vm388_vm13, %v590_v46, %v562_v55  ;;  %v632_v12 = vsel %vm383_vm12, %v628_v29, %v556_v47  ;;  %v635_v14 = vsel %vm383_vm12, %v631_v30, %v562_v55 }
 0x11b   : > { %758 = vst.msk [vmem:[%s1344_s9 + $0x40] sm:$0xff] %vm393_vm14, %v591_v56  ;;  %761 = vst.msk [vmem:[%s1344_s9 + $0x58] sm:$0xff] %vm393_vm14, %v594_v52 }
 0x11d   : > { %v560_v13 = vpop.permute.xlu0 %559  ;;  %v603_v22 = vpop.permute.xlu1 %602 }
 0x11e   : > { %v593_v53 = vsel %vm388_vm13, %v589_v58, %v560_v13  ;;  %v637_v60 = vsel %vm388_vm13, %v633_v6, %v603_v22  ;;  %v634_v32 = vsel %vm383_vm12, %v630_v2, %v560_v13 }
 0x11f   : > { %760 = vst.msk [vmem:[%s1344_s9 + $0x50] sm:$0xff] %vm393_vm14, %v593_v53  ;;  %763 = vst.msk [vmem:[%s1344_s9 + $0x68] sm:$0xff] %vm393_vm14, %v637_v60 }
 0x121   : > { %v601_v15 = vpop.permute.xlu0 %600  ;;  %v607_v40 = vpop.permute.xlu1 %606 }
 0x122   : > { %v636_v19 = vsel %vm388_vm13, %v632_v12, %v601_v15  ;;  %v639_v48 = vsel %vm388_vm13, %v635_v14, %v607_v40 }
 0x123   : > { %762 = vst.msk [vmem:[%s1344_s9 + $0x60] sm:$0xff] %vm393_vm14, %v636_v19  ;;  %765 = vst.msk [vmem:[%s1344_s9 + $0x78] sm:$0xff] %vm393_vm14, %v639_v48 }
 0x125   : > { %v605_v35 = vpop.permute.xlu0 %604 }
 0x126   : > { %v638_v36 = vsel %vm388_vm13, %v634_v32, %v605_v35 }
 0x127   : > { %764 = vst.msk [vmem:[%s1344_s9 + $0x70] sm:$0xff] %vm393_vm14, %v638_v36 }
 0x128 PF: > { %s14_s11 = sadd.s32 1, %s913_s11   ;;  %s1559_s6 = smov %s897_s7 }
 0x129   : > { %p11_p8 = scmp.ge.s32.totalorder %s14_s11, 4   ;;  %s1560_s7 = smov %s901_s8 }
 0x12a   : > { %s1561_s8 = smov %s985_s18  ;;  %s1562_s9 = smov %s909_s10 }
 0x12b   : > { %s1563_s10 = smov %s1565_s13  ;;  %13 = sbr.rel (!%p11_p8) target bundleno = 4 (0x4), region = 67 }
 0x130   :  { %674 = vsyncpa [#allocation3], 1 }
 0x131   :  { %676 = vsyncpa [#allocation3 + $0x1], 1 }

</bundles_post_ra>
